<compile_context>
chip_gen: v5e
topology: v5e:2x2
jax: 0.10.0
libtpu: 0.0.40
codegen_flags: <defaults>
</compile_context>

<pallas_src>
import jax
import jax.numpy as jnp
from jax.experimental import pallas as pl
from jax.experimental.pallas import tpu as pltpu


# ----------------------------- constants ------------------------------------

LANE = 128   # vreg lane width
SUB = 8      # vreg sublane count

FEAT_DIM = 6
PROMPT_DIM = 2
GNN_HIDDEN_DIMS = [32, 64]       # (module default is [128, 512]; small demo dims)
MLP_HIDDEN_DIMS = [64, 32]       # (module default is [1024, 512]; small demo dims)
XANES_OUT = 100                  # fixed by the module


def _rup(x, m):
    return ((x + m - 1) // m) * m


def _pick_tile(total, max_tile):
    """Largest multiple of LANE <= max_tile that divides `total` (total % LANE == 0)."""
    t = (min(total, max_tile) // LANE) * LANE
    while total % t != 0:
        t -= LANE
    return t


def _vmem_limit(nbytes):
    """Scoped-VMEM request with headroom, clamped to a value that exists on
    every TPU generation (v7x physical VMEM is 64 MiB)."""
    return int(min(64 * 1024 * 1024, max(2 * nbytes, 16 * 1024 * 1024)))


# ----------------------------- padding helpers -------------------------------

def _pad2d(x, rows, cols, dtype):
    out = jnp.zeros((rows, cols), dtype)
    return out.at[:x.shape[0], :x.shape[1]].set(x.astype(dtype))


def _pad_w(w):
    return _pad2d(w, _rup(w.shape[0], LANE), _rup(w.shape[1], LANE), jnp.bfloat16)


def _pad_b(b):
    return _pad2d(b.reshape(1, -1), 1, _rup(b.shape[0], LANE), jnp.float32)


def _fold_bn(layer):
    """Fold eval-mode BatchNorm1d into the preceding Linear."""
    scale = layer['gamma'] * jax.lax.rsqrt(layer['var'] + 1e-5)
    w = layer['w'] * scale[None, :]
    b = (layer['b'] - layer['mean']) * scale + layer['beta']
    return w, b


# ----------------------------- GIN layer kernel ------------------------------
#   new_x = ReLU( ((A + I) @ x) @ W + b )
#   grid = (node-row panels [parallel], K panels [arbitrary, last])

def _gin_kernel(a_ref, x_ref, w_ref, b_ref, o_ref, acc_ref):
    k = pl.program_id(1)

    @pl.when(k == 0)
    def _():
        acc_ref[...] = jnp.zeros_like(acc_ref)

    # Aggregation accumulated in f32 so bf16 rounding does not grow with
    # node degree / graph size.
    acc_ref[...] += jnp.dot(a_ref[...], x_ref[...],
                            preferred_element_type=jnp.float32)

    @pl.when(k == pl.num_programs(1) - 1)
    def _():
        h = jnp.dot(acc_ref[...].astype(jnp.bfloat16), w_ref[...],
                    preferred_element_type=jnp.float32)
        # NOTE: padded node rows become ReLU(b) garbage here (A_hat rows are
        # zero).  Safe only because padded *columns* of A_hat and seg are zero,
        # so padded rows never feed real outputs.
        o_ref[...] = jnp.maximum(h + b_ref[...], 0.0).astype(o_ref.dtype)


def _gin_layer(a_hat_p, x_p, w_p, b_p, *, tm, tk):
    Np = a_hat_p.shape[0]
    hin = x_p.shape[1]
    hout = w_p.shape[1]
    grid = (Np // tm, Np // tk)

    flops = 2 * Np * Np * hin + 2 * Np * hin * hout
    bytes_accessed = (a_hat_p.size * 2 + x_p.size * 2 * (Np // tm)
                      + w_p.size * 2 + b_p.size * 4 + Np * hout * 2)
    footprint = (2 * tm * tk * 2 + 2 * tk * hin * 2 + 2 * hin * hout * 2
                 + 2 * SUB * hout * 4 + 2 * tm * hout * 2 + tm * hin * 4)

    return pl.pallas_call(
        _gin_kernel,
        out_shape=jax.ShapeDtypeStruct((Np, hout), jnp.bfloat16),
        grid_spec=pltpu.PrefetchScalarGridSpec(
            num_scalar_prefetch=0,
            grid=grid,
            in_specs=[
                pl.BlockSpec((tm, tk), lambda i, k: (i, k)),     # A_hat panel
                pl.BlockSpec((tk, hin), lambda i, k: (k, 0)),    # x K-panel
                pl.BlockSpec((hin, hout), lambda i, k: (0, 0)),  # W (resident)
                pl.BlockSpec((1, hout), lambda i, k: (0, 0)),    # b (resident)
            ],
            out_specs=pl.BlockSpec((tm, hout), lambda i, k: (i, 0)),
            scratch_shapes=[pltpu.VMEM((tm, hin), jnp.float32)],
        ),
        compiler_params=pltpu.CompilerParams(
            dimension_semantics=("parallel", "arbitrary"),
            vmem_limit_bytes=_vmem_limit(footprint)),
        cost_estimate=pl.CostEstimate(flops=flops, transcendentals=0,
                                      bytes_accessed=bytes_accessed),
    )(a_hat_p, x_p, w_p, b_p)


# ----------------------------- fused head kernel -----------------------------
#   pooled = seg @ x  (streamed over node panels), then
#   prompt Linear + split-weight MLP head (BN folded), all at the last panel.

def _make_head_kernel(n_extra_mlp, pp, m1p, hidden_p_dims, dout_p):
    bf16 = jnp.bfloat16

    def kernel(*refs):
        it = iter(refs)
        seg_ref = next(it)
        x_ref = next(it)
        prompt_ref = next(it)
        pw_ref = next(it)
        m0wp_ref = next(it)
        m0wq_ref = next(it)
        mlp_w_refs = [next(it) for _ in range(n_extra_mlp)]
        wlast_ref = next(it)
        bias_ref = next(it)
        o_ref = next(it)
        pooled = next(it)

        k = pl.program_id(0)

        @pl.when(k == 0)
        def _():
            pooled[...] = jnp.zeros_like(pooled)

        # dgl.sum_nodes: per-graph node sum, streamed over node panels.
        pooled[...] += jnp.dot(seg_ref[...], x_ref[...],
                               preferred_element_type=jnp.float32)

        @pl.when(k == pl.num_programs(0) - 1)
        def _():
            def mm(a, b):
                return jnp.dot(a.astype(bf16), b,
                               preferred_element_type=jnp.float32)

            bias = bias_ref[...]
            # prompt = prompt_nn(prompt)
            p = mm(prompt_ref[...], pw_ref[...]) + bias[0:1, :pp]
            # cat([pooled, prompt]) @ W0 == pooled @ W0_pool + prompt @ W0_prompt
            z = mm(pooled[...], m0wp_ref[...]) + mm(p, m0wq_ref[...]) \
                + bias[1:2, :m1p]
            z = jnp.maximum(z, 0.0)
            for li, w_ref in enumerate(mlp_w_refs):
                d = hidden_p_dims[li]
                z = jnp.maximum(mm(z, w_ref[...]) + bias[2 + li:3 + li, :d], 0.0)
            last_row = 2 + n_extra_mlp
            o_ref[...] = mm(z, wlast_ref[...]) + bias[last_row:last_row + 1, :dout_p]

    return kernel


def _head(seg_p, x_p, prompt_p, pw_p, m0wp_p, m0wq_p, mlp_w_ps, wlast_p,
          bias_pack, *, tk):
    Bp, Np = seg_p.shape
    hl = x_p.shape[1]
    pp = pw_p.shape[1]
    m1p = m0wp_p.shape[1]
    hidden_p_dims = [w.shape[1] for w in mlp_w_ps]
    dout_p = wlast_p.shape[1]
    grid = (Np // tk,)

    kernel = _make_head_kernel(len(mlp_w_ps), pp, m1p, hidden_p_dims, dout_p)

    weights = [pw_p, m0wp_p, m0wq_p, *mlp_w_ps, wlast_p]
    flops = 2 * Bp * Np * hl + sum(2 * Bp * w.shape[0] * w.shape[1]
                                   for w in weights)
    bytes_accessed = (seg_p.size * 2 + x_p.size * 2 + prompt_p.size * 2
                      + sum(w.size * 2 for w in weights)
                      + bias_pack.size * 4 + Bp * dout_p * 4)
    footprint = (2 * (Bp * tk * 2 + tk * hl * 2)
                 + sum(w.size * 2 for w in weights) + prompt_p.size * 2
                 + bias_pack.size * 4 + Bp * dout_p * 4 + Bp * hl * 4)

    in_specs = [
        pl.BlockSpec((Bp, tk), lambda k: (0, k)),   # seg node-panel
        pl.BlockSpec((tk, hl), lambda k: (k, 0)),   # x node-panel
    ] + [pl.BlockSpec(a.shape, lambda k: (0, 0))
         for a in (prompt_p, pw_p, m0wp_p, m0wq_p, *mlp_w_ps, wlast_p, bias_pack)]

    return pl.pallas_call(
        kernel,
        out_shape=jax.ShapeDtypeStruct((Bp, dout_p), jnp.float32),
        grid_spec=pltpu.PrefetchScalarGridSpec(
            num_scalar_prefetch=0,
            grid=grid,
            in_specs=in_specs,
            out_specs=pl.BlockSpec((Bp, dout_p), lambda k: (0, 0)),
            scratch_shapes=[pltpu.VMEM((Bp, hl), jnp.float32)],
        ),
        compiler_params=pltpu.CompilerParams(
            dimension_semantics=("arbitrary",),
            vmem_limit_bytes=_vmem_limit(footprint)),
        cost_estimate=pl.CostEstimate(flops=flops, transcendentals=0,
                                      bytes_accessed=bytes_accessed),
    )(seg_p, x_p, prompt_p, pw_p, m0wp_p, m0wq_p, *mlp_w_ps, wlast_p, bias_pack)


# ----------------------------- forward wrapper -------------------------------

def crystal_xas_forward(params, a_hat, seg, feat, prompt):
    """Forward pass of CrystalXASV1 with xas_type='XANES' (eval mode)."""
    N = a_hat.shape[0]
    B = seg.shape[0]
    F = feat.shape[1]
    P = prompt.shape[1]
    Np = _rup(N, LANE)     # node count padded -> lane-dense contraction dims
    Bp = _rup(B, SUB)      # batch rows padded to a full sublane group

    bf16 = jnp.bfloat16
    f32 = jnp.float32

    tm = _pick_tile(Np, 256)   # node-row panel (parallel axis -> megacore split)
    tk = _pick_tile(Np, 512)   # reduction panel (streamed, double-buffered)

    # A_hat entries {0,1,2} and seg entries {0,1} are exactly representable in
    # bf16.  feat / prompt shipped as bf16 (MXU operands) to halve DMA bytes.
    a_hat_p = _pad2d(a_hat, Np, Np, bf16)
    seg_p = _pad2d(seg, Bp, Np, bf16)
    x = _pad2d(feat, Np, _rup(F, LANE), bf16)
    prompt_p = _pad2d(prompt, Bp, _rup(P, LANE), bf16)

    # GIN stack: one streamed pallas_call per layer (layers are sequentially
    # dependent, so row panels of layer i+1 need all of layer i).  The bf16
    # HBM round-trip between layers is Np*H*2 B << the Np^2*2 B A_hat read.
    for (w, b) in params['gin']:
        # (A_hat @ x) @ W association is only the cheap one while in <= out.
        assert w.shape[0] <= w.shape[1], \
            "re-associate to A_hat @ (x @ W) for shrinking GIN layers"
        x = _gin_layer(a_hat_p, x, _pad_w(w), _pad_b(b), tm=tm, tk=tk)

    # MLP head params: fold eval-mode BN, split first weight (kills the concat).
    mlp = params['mlp']
    h_last = params['gin'][-1][0].shape[1]
    w0, b0 = _fold_bn(mlp[0])
    m0wp = _pad_w(w0[:h_last])
    m0wq = _pad_w(w0[h_last:])
    mlp_w_ps, hidden_biases = [], []
    for layer in mlp[1:-1]:
        w, b = _fold_bn(layer)
        mlp_w_ps.append(_pad_w(w))
        hidden_biases.append(b)
    last = mlp[-1]
    wlast = _pad_w(last['w'])
    d_out = last['w'].shape[1]

    # Pack all small head biases into ONE VMEM array (fewer DMA descriptors).
    biases = [params['prompt_b'], b0, *hidden_biases, last['b']]
    dmax_p = max(_rup(bb.shape[0], LANE) for bb in biases)
    bias_pack = jnp.zeros((_rup(len(biases), SUB), dmax_p), f32)
    for i, bb in enumerate(biases):
        bias_pack = bias_pack.at[i, :bb.shape[0]].set(bb.astype(f32))

    out_padded = _head(seg_p, x, prompt_p, _pad_w(params['prompt_w']),
                       m0wp, m0wq, mlp_w_ps, wlast, bias_pack, tk=tk)
    return out_padded[:B, :d_out]


crystal_xas_forward_jit = jax.jit(crystal_xas_forward)


# ----------------------------- parameters ------------------------------------

def init_params(key):
    """Deterministic in-script parameter init (not a checkpoint load)."""
    params = {}

    def dense(key, din, dout, scale=0.05):
        kw, kb = jax.random.split(key)
        w = scale * jax.random.normal(kw, (din, dout), jnp.float32)
        b = scale * jax.random.normal(kb, (dout,), jnp.float32)
        return w, b

    keys = jax.random.split(key, 8)

    # prompt_nn: Linear(prompt_dim, prompt_dim)
    params['prompt_w'], params['prompt_b'] = dense(keys[0], PROMPT_DIM, PROMPT_DIM)

    # GIN apply_funcs: Linear over dims [feat_dim] + gnn_hidden_dims
    gnn_dims = [FEAT_DIM] + GNN_HIDDEN_DIMS
    params['gin'] = []
    for i in range(len(gnn_dims) - 1):
        w, b = dense(keys[1 + i], gnn_dims[i], gnn_dims[i + 1])
        params['gin'].append((w, b))

    # XANES head MLPBlock: dims [gnn_last + prompt, *mlp_hidden, 100]
    mlp_dims = [GNN_HIDDEN_DIMS[-1] + PROMPT_DIM] + MLP_HIDDEN_DIMS + [XANES_OUT]
    params['mlp'] = []
    for i in range(len(mlp_dims) - 1):
        w, b = dense(keys[4 + i], mlp_dims[i], mlp_dims[i + 1])
        layer = {'w': w, 'b': b}
        if i < len(mlp_dims) - 2:
            # BatchNorm1d defaults: gamma=1, beta=0, running_mean=0, running_var=1
            d = mlp_dims[i + 1]
            layer['gamma'] = jnp.ones((d,), jnp.float32)
            layer['beta'] = jnp.zeros((d,), jnp.float32)
            layer['mean'] = jnp.zeros((d,), jnp.float32)
            layer['var'] = jnp.ones((d,), jnp.float32)
        params['mlp'].append(layer)
    return params


# ----------------------------- pure-JAX reference -----------------------------

def reference_forward(params, a_hat, seg, feat, prompt):
    p = prompt @ params['prompt_w'] + params['prompt_b']
    x = feat
    for (w, b) in params['gin']:
        x = jnp.maximum((a_hat @ x) @ w + b, 0.0)
    pooled = seg @ x
    z = jnp.concatenate([pooled, p], axis=-1)
    for layer in params['mlp'][:-1]:
        y = z @ layer['w'] + layer['b']
        y = (y - layer['mean']) * jax.lax.rsqrt(layer['var'] + 1e-5) \
            * layer['gamma'] + layer['beta']
        z = jnp.maximum(y, 0.0)
    last = params['mlp'][-1]
    return z @ last['w'] + last['b']


# ----------------------------- demo ------------------------------------------

if __name__ == "__main__":
    key = jax.random.PRNGKey(0)
    k_feat, k_prompt, k_params = jax.random.split(key, 3)

    # Batched graph: 2 graphs with 5 and 3 nodes -> N = 8 total nodes.
    B = 2
    nodes_per_graph = [5, 3]
    N = sum(nodes_per_graph)

    # Block-diagonal ring adjacency per graph, plus self loops (A_hat = A + I).
    a = jnp.zeros((N, N), jnp.float32)
    off = 0
    for n_g in nodes_per_graph:
        for u in range(n_g):
            v = (u + 1) % n_g
            a = a.at[off + u, off + v].set(1.0)
            a = a.at[off + v, off + u].set(1.0)
        off += n_g
    a_hat = a + jnp.eye(N, dtype=jnp.float32)

    # Graph membership (segment) matrix S: [B, N]
    seg = jnp.zeros((B, N), jnp.float32)
    off = 0
    for g, n_g in enumerate(nodes_per_graph):
        seg = seg.at[g, off:off + n_g].set(1.0)
        off += n_g

    # Node features and per-graph prompt features.
    feat = jax.random.normal(k_feat, (N, FEAT_DIM), jnp.float32)
    prompt = jax.random.normal(k_prompt, (B, PROMPT_DIM), jnp.float32)

    params = init_params(k_params)

    spectrum = crystal_xas_forward_jit(params, a_hat, seg, feat, prompt)
    spectrum = jax.block_until_ready(spectrum)

    assert spectrum.shape == (B, XANES_OUT)
    assert spectrum.dtype == jnp.float32

    # Numerical sanity vs. pure-JAX f32 reference (kernel uses bf16 MXU inputs
    # with f32 accumulation, so allow bf16-level rounding).
    ref = reference_forward(params, a_hat, seg, feat, prompt)
    err = float(jnp.max(jnp.abs(spectrum - ref)))
    assert err < 5e-2, f"max abs error vs reference: {err}"

    print("KERNEL_OK")
</pallas_src>

<mosaic_0001>
module attributes {stable_mosaic.version = 11 : i64} {
  func.func @_gin_kernel(%arg0: i32, %arg1: i32, %arg2: memref<128x128xbf16, #tpu.memory_space<vmem>>, %arg3: memref<128x128xbf16, #tpu.memory_space<vmem>>, %arg4: memref<128x128xbf16, #tpu.memory_space<vmem>>, %arg5: memref<1x128xf32, #tpu.memory_space<vmem>>, %arg6: memref<128x128xbf16, #tpu.memory_space<vmem>>, %arg7: memref<128x128xf32, #tpu.memory_space<vmem>>) attributes {dimension_semantics = [#tpu.dimension_semantics<parallel>, #tpu.dimension_semantics<arbitrary>], iteration_bounds = array<i64: 1, 1>, scalar_prefetch = 0 : i64, scratch_operands = 1 : i64, tpu.core_type = #tpu.core_type<tc>, window_params = [{transform_indices = @transform_0, window_bounds = array<i64: 128, 128>}, {transform_indices = @transform_1, window_bounds = array<i64: 128, 128>}, {pipeline_mode = #tpu.pipeline_mode<synchronous>, transform_indices = @transform_2, window_bounds = array<i64: 128, 128>}, {pipeline_mode = #tpu.pipeline_mode<synchronous>, transform_indices = @transform_3, window_bounds = array<i64: 1, 128>}, {transform_indices = @transform_4, window_bounds = array<i64: 128, 128>}]} {
    %c0_i32 = arith.constant 0 : i32
    %0 = arith.cmpi eq, %arg1, %c0_i32 : i32
    %1 = arith.extui %0 : i1 to i32
    %c0_i32_0 = arith.constant 0 : i32
    %2 = arith.cmpi ne, %1, %c0_i32_0 : i32
    scf.if %2 {
      %cst_10 = arith.constant 0.000000e+00 : f32
      %12 = vector.broadcast %cst_10 : f32 to vector<128x128xf32>
      %c0_11 = arith.constant 0 : index
      %c0_12 = arith.constant 0 : index
      %13 = vector.load %arg7[%c0_11, %c0_12] : memref<128x128xf32, #tpu.memory_space<vmem>>, vector<128x128xf32>
      tpu.vector_store %arg7[%c0_11, %c0_12], %12 {strides = array<i32>} : memref<128x128xf32, #tpu.memory_space<vmem>>, vector<128x128xf32>,
    } else {
    }
    %c0 = arith.constant 0 : index
    %c0_1 = arith.constant 0 : index
    %3 = vector.load %arg7[%c0, %c0_1] : memref<128x128xf32, #tpu.memory_space<vmem>>, vector<128x128xf32>
    %c0_2 = arith.constant 0 : index
    %c0_3 = arith.constant 0 : index
    %4 = vector.load %arg2[%c0_2, %c0_3] : memref<128x128xbf16, #tpu.memory_space<vmem>>, vector<128x128xbf16>
    %c0_4 = arith.constant 0 : index
    %c0_5 = arith.constant 0 : index
    %5 = vector.load %arg3[%c0_4, %c0_5] : memref<128x128xbf16, #tpu.memory_space<vmem>>, vector<128x128xbf16>
    %cst = arith.constant dense<0.000000e+00> : vector<128x128xf32>
    %6 = tpu.matmul %4, %5, %cst {dimension_numbers = #tpu.dot_dimension_numbers<[1], [0], [0], [1], [0, 0, 1, 1], [], []>} : vector<128x128xbf16>, vector<128x128xbf16>, vector<128x128xf32> -> vector<128x128xf32>
    %7 = arith.addf %3, %6 : vector<128x128xf32>
    %c0_6 = arith.constant 0 : index
    %c0_7 = arith.constant 0 : index
    %8 = vector.load %arg7[%c0_6, %c0_7] : memref<128x128xf32, #tpu.memory_space<vmem>>, vector<128x128xf32>
    tpu.vector_store %arg7[%c0_6, %c0_7], %7 {strides = array<i32>} : memref<128x128xf32, #tpu.memory_space<vmem>>, vector<128x128xf32>,
    %c0_i32_8 = arith.constant 0 : i32
    %9 = arith.cmpi eq, %arg1, %c0_i32_8 : i32
    %10 = arith.extui %9 : i1 to i32
    %c0_i32_9 = arith.constant 0 : i32
    %11 = arith.cmpi ne, %10, %c0_i32_9 : i32
    scf.if %11 {
      %c0_10 = arith.constant 0 : index
      %c0_11 = arith.constant 0 : index
      %12 = vector.load %arg7[%c0_10, %c0_11] : memref<128x128xf32, #tpu.memory_space<vmem>>, vector<128x128xf32>
      %13 = arith.truncf %12 : vector<128x128xf32> to vector<128x128xbf16>
      %c0_12 = arith.constant 0 : index
      %c0_13 = arith.constant 0 : index
      %14 = vector.load %arg4[%c0_12, %c0_13] : memref<128x128xbf16, #tpu.memory_space<vmem>>, vector<128x128xbf16>
      %cst_14 = arith.constant dense<0.000000e+00> : vector<128x128xf32>
      %15 = tpu.matmul %13, %14, %cst_14 {dimension_numbers = #tpu.dot_dimension_numbers<[1], [0], [0], [1], [0, 0, 1, 1], [], []>} : vector<128x128xbf16>, vector<128x128xbf16>, vector<128x128xf32> -> vector<128x128xf32>
      %c0_15 = arith.constant 0 : index
      %c0_16 = arith.constant 0 : index
      %16 = vector.load %arg5[%c0_15, %c0_16] : memref<1x128xf32, #tpu.memory_space<vmem>>, vector<1x128xf32>
      %17 = vector.broadcast %16 : vector<1x128xf32> to vector<128x128xf32>
      %18 = arith.addf %15, %17 : vector<128x128xf32>
      %cst_17 = arith.constant 0.000000e+00 : f32
      %19 = vector.broadcast %cst_17 : f32 to vector<128x128xf32>
      %20 = arith.maximumf %18, %19 : vector<128x128xf32>
      %21 = arith.truncf %20 : vector<128x128xf32> to vector<128x128xbf16>
      %c0_18 = arith.constant 0 : index
      %c0_19 = arith.constant 0 : index
      %22 = vector.load %arg6[%c0_18, %c0_19] : memref<128x128xbf16, #tpu.memory_space<vmem>>, vector<128x128xbf16>
      tpu.vector_store %arg6[%c0_18, %c0_19], %21 {strides = array<i32>} : memref<128x128xbf16, #tpu.memory_space<vmem>>, vector<128x128xbf16>,
    } else {
    }
    return
  }
  func.func @transform_0(%arg0: i32, %arg1: i32) -> (i32, i32) {
    %c0_i32 = arith.constant 0 : i32
    return %arg0, %arg1 : i32, i32
  }
  func.func @transform_1(%arg0: i32, %arg1: i32) -> (i32, i32) {
    %c0_i32 = arith.constant 0 : i32
    %c0_i32_0 = arith.constant 0 : i32
    return %arg1, %c0_i32 : i32, i32
  }
  func.func @transform_2(%arg0: i32, %arg1: i32) -> (i32, i32) {
    %c0_i32 = arith.constant 0 : i32
    %c0_i32_0 = arith.constant 0 : i32
    %c0_i32_1 = arith.constant 0 : i32
    return %c0_i32, %c0_i32_0 : i32, i32
  }
  func.func @transform_3(%arg0: i32, %arg1: i32) -> (i32, i32) {
    %c0_i32 = arith.constant 0 : i32
    %c0_i32_0 = arith.constant 0 : i32
    %c0_i32_1 = arith.constant 0 : i32
    return %c0_i32, %c0_i32_0 : i32, i32
  }
  func.func @transform_4(%arg0: i32, %arg1: i32) -> (i32, i32) {
    %c0_i32 = arith.constant 0 : i32
    %c0_i32_0 = arith.constant 0 : i32
    return %arg0, %c0_i32 : i32, i32
  }
}

module attributes {stable_mosaic.version = 11 : i64} {
  func.func @kernel(%arg0: i32, %arg1: memref<8x128xbf16, #tpu.memory_space<vmem>>, %arg2: memref<128x128xbf16, #tpu.memory_space<vmem>>, %arg3: memref<8x128xbf16, #tpu.memory_space<vmem>>, %arg4: memref<128x128xbf16, #tpu.memory_space<vmem>>, %arg5: memref<128x128xbf16, #tpu.memory_space<vmem>>, %arg6: memref<128x128xbf16, #tpu.memory_space<vmem>>, %arg7: memref<128x128xbf16, #tpu.memory_space<vmem>>, %arg8: memref<128x128xbf16, #tpu.memory_space<vmem>>, %arg9: memref<8x128xf32, #tpu.memory_space<vmem>>, %arg10: memref<8x128xf32, #tpu.memory_space<vmem>>, %arg11: memref<8x128xf32, #tpu.memory_space<vmem>>) attributes {dimension_semantics = [#tpu.dimension_semantics<arbitrary>], iteration_bounds = array<i64: 1>, scalar_prefetch = 0 : i64, scratch_operands = 1 : i64, tpu.core_type = #tpu.core_type<tc>, window_params = [{transform_indices = @transform_0, window_bounds = array<i64: 8, 128>}, {transform_indices = @transform_1, window_bounds = array<i64: 128, 128>}, {pipeline_mode = #tpu.pipeline_mode<synchronous>, transform_indices = @transform_2, window_bounds = array<i64: 8, 128>}, {pipeline_mode = #tpu.pipeline_mode<synchronous>, transform_indices = @transform_3, window_bounds = array<i64: 128, 128>}, {pipeline_mode = #tpu.pipeline_mode<synchronous>, transform_indices = @transform_4, window_bounds = array<i64: 128, 128>}, {pipeline_mode = #tpu.pipeline_mode<synchronous>, transform_indices = @transform_5, window_bounds = array<i64: 128, 128>}, {pipeline_mode = #tpu.pipeline_mode<synchronous>, transform_indices = @transform_6, window_bounds = array<i64: 128, 128>}, {pipeline_mode = #tpu.pipeline_mode<synchronous>, transform_indices = @transform_7, window_bounds = array<i64: 128, 128>}, {pipeline_mode = #tpu.pipeline_mode<synchronous>, transform_indices = @transform_8, window_bounds = array<i64: 8, 128>}, {pipeline_mode = #tpu.pipeline_mode<synchronous>, transform_indices = @transform_9, window_bounds = array<i64: 8, 128>}]} {
    %c0_i32 = arith.constant 0 : i32
    %0 = arith.cmpi eq, %arg0, %c0_i32 : i32
    %1 = arith.extui %0 : i1 to i32
    %c0_i32_0 = arith.constant 0 : i32
    %2 = arith.cmpi ne, %1, %c0_i32_0 : i32
    scf.if %2 {
      %cst_10 = arith.constant 0.000000e+00 : f32
      %12 = vector.broadcast %cst_10 : f32 to vector<8x128xf32>
      %c0_11 = arith.constant 0 : index
      %c0_12 = arith.constant 0 : index
      %13 = vector.load %arg11[%c0_11, %c0_12] : memref<8x128xf32, #tpu.memory_space<vmem>>, vector<8x128xf32>
      tpu.vector_store %arg11[%c0_11, %c0_12], %12 {strides = array<i32>} : memref<8x128xf32, #tpu.memory_space<vmem>>, vector<8x128xf32>,
    } else {
    }
    %c0 = arith.constant 0 : index
    %c0_1 = arith.constant 0 : index
    %3 = vector.load %arg11[%c0, %c0_1] : memref<8x128xf32, #tpu.memory_space<vmem>>, vector<8x128xf32>
    %c0_2 = arith.constant 0 : index
    %c0_3 = arith.constant 0 : index
    %4 = vector.load %arg1[%c0_2, %c0_3] : memref<8x128xbf16, #tpu.memory_space<vmem>>, vector<8x128xbf16>
    %c0_4 = arith.constant 0 : index
    %c0_5 = arith.constant 0 : index
    %5 = vector.load %arg2[%c0_4, %c0_5] : memref<128x128xbf16, #tpu.memory_space<vmem>>, vector<128x128xbf16>
    %cst = arith.constant dense<0.000000e+00> : vector<8x128xf32>
    %6 = tpu.matmul %4, %5, %cst {dimension_numbers = #tpu.dot_dimension_numbers<[1], [0], [0], [1], [0, 0, 1, 1], [], []>} : vector<8x128xbf16>, vector<128x128xbf16>, vector<8x128xf32> -> vector<8x128xf32>
    %7 = arith.addf %3, %6 : vector<8x128xf32>
    %c0_6 = arith.constant 0 : index
    %c0_7 = arith.constant 0 : index
    %8 = vector.load %arg11[%c0_6, %c0_7] : memref<8x128xf32, #tpu.memory_space<vmem>>, vector<8x128xf32>
    tpu.vector_store %arg11[%c0_6, %c0_7], %7 {strides = array<i32>} : memref<8x128xf32, #tpu.memory_space<vmem>>, vector<8x128xf32>,
    %c0_i32_8 = arith.constant 0 : i32
    %9 = arith.cmpi eq, %arg0, %c0_i32_8 : i32
    %10 = arith.extui %9 : i1 to i32
    %c0_i32_9 = arith.constant 0 : i32
    %11 = arith.cmpi ne, %10, %c0_i32_9 : i32
    scf.if %11 {
      %c0_10 = arith.constant 0 : index
      %c0_11 = arith.constant 0 : index
      %12 = vector.load %arg9[%c0_10, %c0_11] : memref<8x128xf32, #tpu.memory_space<vmem>>, vector<8x128xf32>
      %c0_12 = arith.constant 0 : index
      %c0_13 = arith.constant 0 : index
      %13 = vector.load %arg3[%c0_12, %c0_13] : memref<8x128xbf16, #tpu.memory_space<vmem>>, vector<8x128xbf16>
      %c0_14 = arith.constant 0 : index
      %c0_15 = arith.constant 0 : index
      %14 = vector.load %arg4[%c0_14, %c0_15] : memref<128x128xbf16, #tpu.memory_space<vmem>>, vector<128x128xbf16>
      %cst_16 = arith.constant dense<0.000000e+00> : vector<8x128xf32>
      %15 = tpu.matmul %13, %14, %cst_16 {dimension_numbers = #tpu.dot_dimension_numbers<[1], [0], [0], [1], [0, 0, 1, 1], [], []>} : vector<8x128xbf16>, vector<128x128xbf16>, vector<8x128xf32> -> vector<8x128xf32>
      %16 = vector.extract_strided_slice %12 {offsets = [0, 0], sizes = [1, 128], strides = [1, 1]} : vector<8x128xf32> to vector<1x128xf32>
      %17 = vector.broadcast %16 : vector<1x128xf32> to vector<8x128xf32>
      %18 = arith.addf %15, %17 : vector<8x128xf32>
      %c0_17 = arith.constant 0 : index
      %c0_18 = arith.constant 0 : index
      %19 = vector.load %arg11[%c0_17, %c0_18] : memref<8x128xf32, #tpu.memory_space<vmem>>, vector<8x128xf32>
      %c0_19 = arith.constant 0 : index
      %c0_20 = arith.constant 0 : index
      %20 = vector.load %arg5[%c0_19, %c0_20] : memref<128x128xbf16, #tpu.memory_space<vmem>>, vector<128x128xbf16>
      %21 = arith.truncf %19 : vector<8x128xf32> to vector<8x128xbf16>
      %cst_21 = arith.constant dense<0.000000e+00> : vector<8x128xf32>
      %22 = tpu.matmul %21, %20, %cst_21 {dimension_numbers = #tpu.dot_dimension_numbers<[1], [0], [0], [1], [0, 0, 1, 1], [], []>} : vector<8x128xbf16>, vector<128x128xbf16>, vector<8x128xf32> -> vector<8x128xf32>
      %c0_22 = arith.constant 0 : index
      %c0_23 = arith.constant 0 : index
      %23 = vector.load %arg6[%c0_22, %c0_23] : memref<128x128xbf16, #tpu.memory_space<vmem>>, vector<128x128xbf16>
      %24 = arith.truncf %18 : vector<8x128xf32> to vector<8x128xbf16>
      %cst_24 = arith.constant dense<0.000000e+00> : vector<8x128xf32>
      %25 = tpu.matmul %24, %23, %cst_24 {dimension_numbers = #tpu.dot_dimension_numbers<[1], [0], [0], [1], [0, 0, 1, 1], [], []>} : vector<8x128xbf16>, vector<128x128xbf16>, vector<8x128xf32> -> vector<8x128xf32>
      %26 = arith.addf %22, %25 : vector<8x128xf32>
      %27 = vector.extract_strided_slice %12 {offsets = [1, 0], sizes = [1, 128], strides = [1, 1]} : vector<8x128xf32> to vector<1x128xf32>
      %28 = vector.broadcast %27 : vector<1x128xf32> to vector<8x128xf32>
      %29 = arith.addf %26, %28 : vector<8x128xf32>
      %cst_25 = arith.constant 0.000000e+00 : f32
      %30 = vector.broadcast %cst_25 : f32 to vector<8x128xf32>
      %31 = arith.maximumf %29, %30 : vector<8x128xf32>
      %c0_26 = arith.constant 0 : index
      %c0_27 = arith.constant 0 : index
      %32 = vector.load %arg7[%c0_26, %c0_27] : memref<128x128xbf16, #tpu.memory_space<vmem>>, vector<128x128xbf16>
      %33 = arith.truncf %31 : vector<8x128xf32> to vector<8x128xbf16>
      %cst_28 = arith.constant dense<0.000000e+00> : vector<8x128xf32>
      %34 = tpu.matmul %33, %32, %cst_28 {dimension_numbers = #tpu.dot_dimension_numbers<[1], [0], [0], [1], [0, 0, 1, 1], [], []>} : vector<8x128xbf16>, vector<128x128xbf16>, vector<8x128xf32> -> vector<8x128xf32>
      %35 = vector.extract_strided_slice %12 {offsets = [2, 0], sizes = [1, 128], strides = [1, 1]} : vector<8x128xf32> to vector<1x128xf32>
      %36 = vector.broadcast %35 : vector<1x128xf32> to vector<8x128xf32>
      %37 = arith.addf %34, %36 : vector<8x128xf32>
      %cst_29 = arith.constant 0.000000e+00 : f32
      %38 = vector.broadcast %cst_29 : f32 to vector<8x128xf32>
      %39 = arith.maximumf %37, %38 : vector<8x128xf32>
      %c0_30 = arith.constant 0 : index
      %c0_31 = arith.constant 0 : index
      %40 = vector.load %arg8[%c0_30, %c0_31] : memref<128x128xbf16, #tpu.memory_space<vmem>>, vector<128x128xbf16>
      %41 = arith.truncf %39 : vector<8x128xf32> to vector<8x128xbf16>
      %cst_32 = arith.constant dense<0.000000e+00> : vector<8x128xf32>
      %42 = tpu.matmul %41, %40, %cst_32 {dimension_numbers = #tpu.dot_dimension_numbers<[1], [0], [0], [1], [0, 0, 1, 1], [], []>} : vector<8x128xbf16>, vector<128x128xbf16>, vector<8x128xf32> -> vector<8x128xf32>
      %43 = vector.extract_strided_slice %12 {offsets = [3, 0], sizes = [1, 128], strides = [1, 1]} : vector<8x128xf32> to vector<1x128xf32>
      %44 = vector.broadcast %43 : vector<1x128xf32> to vector<8x128xf32>
      %45 = arith.addf %42, %44 : vector<8x128xf32>
      %c0_33 = arith.constant 0 : index
      %c0_34 = arith.constant 0 : index
      %46 = vector.load %arg10[%c0_33, %c0_34] : memref<8x128xf32, #tpu.memory_space<vmem>>, vector<8x128xf32>
      tpu.vector_store %arg10[%c0_33, %c0_34], %45 {strides = array<i32>} : memref<8x128xf32, #tpu.memory_space<vmem>>, vector<8x128xf32>,
    } else {
    }
    return
  }
  func.func @transform_0(%arg0: i32) -> (i32, i32) {
    %c0_i32 = arith.constant 0 : i32
    %c0_i32_0 = arith.constant 0 : i32
    return %c0_i32, %arg0 : i32, i32
  }
  func.func @transform_1(%arg0: i32) -> (i32, i32) {
    %c0_i32 = arith.constant 0 : i32
    %c0_i32_0 = arith.constant 0 : i32
    return %arg0, %c0_i32 : i32, i32
  }
  func.func @transform_2(%arg0: i32) -> (i32, i32) {
    %c0_i32 = arith.constant 0 : i32
    %c0_i32_0 = arith.constant 0 : i32
    %c0_i32_1 = arith.constant 0 : i32
    return %c0_i32, %c0_i32_0 : i32, i32
  }
  func.func @transform_3(%arg0: i32) -> (i32, i32) {
    %c0_i32 = arith.constant 0 : i32
    %c0_i32_0 = arith.constant 0 : i32
    %c0_i32_1 = arith.constant 0 : i32
    return %c0_i32, %c0_i32_0 : i32, i32
  }
  func.func @transform_4(%arg0: i32) -> (i32, i32) {
    %c0_i32 = arith.constant 0 : i32
    %c0_i32_0 = arith.constant 0 : i32
    %c0_i32_1 = arith.constant 0 : i32
    return %c0_i32, %c0_i32_0 : i32, i32
  }
  func.func @transform_5(%arg0: i32) -> (i32, i32) {
    %c0_i32 = arith.constant 0 : i32
    %c0_i32_0 = arith.constant 0 : i32
    %c0_i32_1 = arith.constant 0 : i32
    return %c0_i32, %c0_i32_0 : i32, i32
  }
  func.func @transform_6(%arg0: i32) -> (i32, i32) {
    %c0_i32 = arith.constant 0 : i32
    %c0_i32_0 = arith.constant 0 : i32
    %c0_i32_1 = arith.constant 0 : i32
    return %c0_i32, %c0_i32_0 : i32, i32
  }
  func.func @transform_7(%arg0: i32) -> (i32, i32) {
    %c0_i32 = arith.constant 0 : i32
    %c0_i32_0 = arith.constant 0 : i32
    %c0_i32_1 = arith.constant 0 : i32
    return %c0_i32, %c0_i32_0 : i32, i32
  }
  func.func @transform_8(%arg0: i32) -> (i32, i32) {
    %c0_i32 = arith.constant 0 : i32
    %c0_i32_0 = arith.constant 0 : i32
    %c0_i32_1 = arith.constant 0 : i32
    return %c0_i32, %c0_i32_0 : i32, i32
  }
  func.func @transform_9(%arg0: i32) -> (i32, i32) {
    %c0_i32 = arith.constant 0 : i32
    %c0_i32_0 = arith.constant 0 : i32
    %c0_i32_1 = arith.constant 0 : i32
    return %c0_i32, %c0_i32_0 : i32, i32
  }
}

</mosaic_0001>

<bundles_post_ra>
// kernel: crystal_xas_forward.3
= control target key start
LH: loop header
LB: loop body
LE: loop exit
PB: predicated region body
PF: predicated region fallthrough
CT: control target
= control target key end

     0   :  { %s766_s1 = inlined_call_operand.vmem [shape: bf16[128,128], index: 1, kind: input, shape index: {}]   ;;  %s767_s0 = inlined_call_operand.vmem [shape: bf16[128,128], index: 0, kind: input, shape index: {}]   ;;  %s768_s2 = inlined_call_operand.vmem [shape: bf16[128,128], index: 2, kind: input, shape index: {}]   ;;  %s769_s3 = inlined_call_operand.vmem [shape: f32[1,128], index: 3, kind: input, shape index: {}]   ;;  %s770_s4 = inlined_call_operand.vmem [shape: bf16[128,128], index: 4, kind: output, shape index: {}]  }
   0x1   :  { %v569_v0 = vld [vmem:[%s766_s1 + $0x38] sm:$0xff]  ;;  %v568_v1 = vld [vmem:[%s766_s1 + $0x30] sm:$0xff]  ;;  %v567_v2 = vld [vmem:[%s766_s1 + $0x28] sm:$0xff] }
   0x2   :  { %181 = vmatpush.bf16.msra.mxu0 %v569_v0  ;;  %625 = vmatpush.bf16.msra.mxu2 %v569_v0  ;;  %v566_v3 = vld [vmem:[%s766_s1 + $0x20] sm:$0xff]  ;;  %v565_v4 = vld [vmem:[%s766_s1 + $0x18] sm:$0xff]  ;;  %v564_v5 = vld [vmem:[%s766_s1 + $0x10] sm:$0xff] }
   0x3   :  { %v563_v6 = vld [vmem:[%s766_s1 + $0x8] sm:$0xff]  ;;  %v562_v7 = vld [vmem:[%s766_s1] sm:$0xff]  ;;  %v577_v12 = vld [vmem:[%s768_s2 + $0x38] sm:$0xff] }
   0x4   :  { %v554_v8 = vld [vmem:[%s767_s0] sm:$0xff]  ;;  %v555_v10 = vld [vmem:[%s767_s0 + $0x8] sm:$0xff]  ;;  %357 = vmatpush.bf16.msra.mxu1 %v577_v12  ;;  %v576_v13 = vld [vmem:[%s768_s2 + $0x30] sm:$0xff]  ;;  %633 = vmatpush.bf16.msra.mxu3 %v577_v12 }
   0x5   :  { %v558_v9 = vld [vmem:[%s767_s0 + $0x20] sm:$0xff]  ;;  %v559_v11 = vld [vmem:[%s767_s0 + $0x28] sm:$0xff]  ;;  %v556_v16 = vld [vmem:[%s767_s0 + $0x10] sm:$0xff] }
   0x6   :  { %182 = vmatpush.bf16.msra.mxu0 %v568_v1  ;;  %626 = vmatpush.bf16.msra.mxu2 %v568_v1  ;;  %v575_v14 = vld [vmem:[%s768_s2 + $0x28] sm:$0xff]  ;;  %v574_v15 = vld [vmem:[%s768_s2 + $0x20] sm:$0xff]  ;;  %v560_v17 = vld [vmem:[%s767_s0 + $0x30] sm:$0xff] }
   0x7   :  { %v573_v18 = vld [vmem:[%s768_s2 + $0x18] sm:$0xff]  ;;  %v572_v21 = vld [vmem:[%s768_s2 + $0x10] sm:$0xff]  ;;  %v571_v22 = vld [vmem:[%s768_s2 + $0x8] sm:$0xff] }
   0x8   :  { %358 = vmatpush.bf16.msra.mxu1 %v576_v13  ;;  %634 = vmatpush.bf16.msra.mxu3 %v576_v13  ;;  %v557_v19 = vld [vmem:[%s767_s0 + $0x18] sm:$0xff]  ;;  %v570_v23 = vld [vmem:[%s768_s2] sm:$0xff] }
   0x9   :  { %v561_v20 = vld [vmem:[%s767_s0 + $0x38] sm:$0xff]  ;;  %v641_v49 = vld [vmem:[%s769_s3] ss:$0 sm:$0xff] }
   0xa   :  { %183 = vmatpush.bf16.msra.mxu0 %v567_v2  ;;  %627 = vmatpush.bf16.msra.mxu2 %v567_v2 }
   0xc   :  { %359 = vmatpush.bf16.msra.mxu1 %v575_v14  ;;  %635 = vmatpush.bf16.msra.mxu3 %v575_v14 }
   0xe   :  { %184 = vmatpush.bf16.msra.mxu0 %v566_v3  ;;  %628 = vmatpush.bf16.msra.mxu2 %v566_v3 }
  0x10   :  { %360 = vmatpush.bf16.msra.mxu1 %v574_v15  ;;  %636 = vmatpush.bf16.msra.mxu3 %v574_v15 }
  0x12   :  { %185 = vmatpush.bf16.msra.mxu0 %v565_v4  ;;  %629 = vmatpush.bf16.msra.mxu2 %v565_v4 }
  0x14   :  { %361 = vmatpush.bf16.msra.mxu1 %v573_v18  ;;  %637 = vmatpush.bf16.msra.mxu3 %v573_v18 }
  0x16   :  { %186 = vmatpush.bf16.msra.mxu0 %v564_v5  ;;  %630 = vmatpush.bf16.msra.mxu2 %v564_v5 }
  0x18   :  { %362 = vmatpush.bf16.msra.mxu1 %v572_v21  ;;  %638 = vmatpush.bf16.msra.mxu3 %v572_v21 }
  0x1a   :  { %187 = vmatpush.bf16.msra.mxu0 %v563_v6  ;;  %631 = vmatpush.bf16.msra.mxu2 %v563_v6 }
  0x1c   :  { %363 = vmatpush.bf16.msra.mxu1 %v571_v22  ;;  %639 = vmatpush.bf16.msra.mxu3 %v571_v22 }
  0x1e   :  { %188 = vmatpush.bf16.msra.mxu0 %v562_v7  ;;  %632 = vmatpush.bf16.msra.mxu2 %v562_v7 }
  0x20   :  { %364 = vmatpush.bf16.msra.mxu1 %v570_v23  ;;  %640 = vmatpush.bf16.msra.mxu3 %v570_v23 }
  0x21   :  { %189 = vmatmul.bf16.vlgmr.msra.gmra.mxu0 %v554_v8  ;;  %209 = vmatmul.bf16.vlgmr.msra.gmra.mxu2 %v558_v9 }
  0x31   :  { %194 = vmatmul.bf16.gmra.mxu0 %v555_v10  ;;  %214 = vmatmul.bf16.gmra.mxu2 %v559_v11 }
  0x41   :  { %199 = vmatmul.bf16.gmra.mxu0 %v556_v16  ;;  %219 = vmatmul.bf16.gmra.mxu2 %v560_v17 }
  0x51   :  { %204 = vmatmul.bf16.gmra.mxu0 %v557_v19  ;;  %224 = vmatmul.bf16.gmra.mxu2 %v561_v20 }
  0x9e   :  { %v190_v24 = vpop.f32.mrf.mxu0 }
  0xa4   :  { %v210_v25 = vpop.f32.mrf.mxu2 }
  0xa6   :  { %v192_v26 = vpop.f32.mrf.mxu0 }
  0xa7   :  { %v281_v27 = vpack.c.bf16 %v192_v26, %v190_v24 }
  0xa9   :  { %365 = vmatmul.bf16.vlgmr.msra.gmra.mxu1 %v281_v27 }
  0xac   :  { %v212_v28 = vpop.f32.mrf.mxu2 }
  0xad   :  { %v285_v29 = vpack.c.bf16 %v212_v28, %v210_v25 }
  0xae   :  { %v195_v30 = vpop.f32.mrf.mxu0 }
  0xaf   :  { %385 = vmatmul.bf16.vlgmr.msra.gmra.mxu3 %v285_v29 }
  0xb4   :  { %v215_v31 = vpop.f32.mrf.mxu2 }
  0xb6   :  { %v197_v32 = vpop.f32.mrf.mxu0 }
  0xb7   :  { %v282_v33 = vpack.c.bf16 %v197_v32, %v195_v30 }
  0xb9   :  { %370 = vmatmul.bf16.gmra.mxu1 %v282_v33 }
  0xbc   :  { %v217_v34 = vpop.f32.mrf.mxu2 }
  0xbd   :  { %v286_v35 = vpack.c.bf16 %v217_v34, %v215_v31 }
  0xbe   :  { %v200_v36 = vpop.f32.mrf.mxu0 }
  0xbf   :  { %390 = vmatmul.bf16.gmra.mxu3 %v286_v35 }
  0xc4   :  { %v220_v37 = vpop.f32.mrf.mxu2 }
  0xc6   :  { %v202_v38 = vpop.f32.mrf.mxu0 }
  0xc7   :  { %v283_v39 = vpack.c.bf16 %v202_v38, %v200_v36 }
  0xc9   :  { %375 = vmatmul.bf16.gmra.mxu1 %v283_v39 }
  0xcc   :  { %v222_v40 = vpop.f32.mrf.mxu2 }
  0xcd   :  { %v287_v41 = vpack.c.bf16 %v222_v40, %v220_v37 }
  0xce   :  { %v205_v42 = vpop.f32.mrf.mxu0 }
  0xcf   :  { %395 = vmatmul.bf16.gmra.mxu3 %v287_v41 }
  0xd4   :  { %v225_v43 = vpop.f32.mrf.mxu2 }
  0xd6   :  { %v207_v44 = vpop.f32.mrf.mxu0 }
  0xd7   :  { %v284_v45 = vpack.c.bf16 %v207_v44, %v205_v42 }
  0xd9   :  { %380 = vmatmul.bf16.gmra.mxu1 %v284_v45 }
  0xdc   :  { %v227_v46 = vpop.f32.mrf.mxu2 }
  0xdd   :  { %v288_v47 = vpack.c.bf16 %v227_v46, %v225_v43 }
  0xdf   :  { %400 = vmatmul.bf16.gmra.mxu3 %v288_v47 }
 0x126   :  { %v366_v48 = vpop.f32.mrf.mxu1 }
 0x127   :  { %v367_v50 = vadd.f32 %v641_v49, %v366_v48 }
 0x129   :  { %v406_v53 = vmax.f32 %v367_v50, 0.0 }
 0x12e   :  { %v368_v51 = vpop.f32.mrf.mxu1 }
 0x12f   :  { %v369_v52 = vadd.f32 %v641_v49, %v368_v51 }
 0x131   :  { %v407_v54 = vmax.f32 %v369_v52, 0.0 }
 0x132   :  { %v386_v55 = vpop.f32.mrf.mxu3 }
 0x133   :  { %v581_v56 = vpack.c.bf16 %v407_v54, %v406_v53  ;;  %v387_v58 = vadd.f32 %v641_v49, %v386_v55 }
 0x135   :  { %582 = vst [vmem:[%s770_s4] sm:$0xff] %v581_v56   ;;  %v414_v61 = vmax.f32 %v387_v58, 0.0 }
 0x136   :  { %v371_v57 = vpop.f32.mrf.mxu1 }
 0x137   :  { %v372_v62 = vadd.f32 %v641_v49, %v371_v57 }
 0x139   :  { %v408_v3 = vmax.f32 %v372_v62, 0.0 }
 0x13a   :  { %v388_v59 = vpop.f32.mrf.mxu3 }
 0x13b   :  { %v389_v60 = vadd.f32 %v641_v49, %v388_v59 }
 0x13d   :  { %v415_v63 = vmax.f32 %v389_v60, 0.0 }
 0x13e   :  { %v373_v0 = vpop.f32.mrf.mxu1 }
 0x13f   :  { %v601_v1 = vpack.c.bf16 %v415_v63, %v414_v61  ;;  %v374_v2 = vadd.f32 %v641_v49, %v373_v0 }
 0x141   :  { %621 = vst [vmem:[%s770_s4 + $0x20] sm:$0xff] %v601_v1   ;;  %v409_v4 = vmax.f32 %v374_v2, 0.0 }
 0x142   :  { %v391_v5 = vpop.f32.mrf.mxu3 }
 0x143   :  { %v586_v6 = vpack.c.bf16 %v409_v4, %v408_v3  ;;  %v392_v8 = vadd.f32 %v641_v49, %v391_v5 }
 0x145   :  { %618 = vst [vmem:[%s770_s4 + $0x8] sm:$0xff] %v586_v6   ;;  %v416_v11 = vmax.f32 %v392_v8, 0.0 }
 0x146   :  { %v376_v7 = vpop.f32.mrf.mxu1 }
 0x147   :  { %v377_v12 = vadd.f32 %v641_v49, %v376_v7 }
 0x149   :  { %v410_v17 = vmax.f32 %v377_v12, 0.0 }
 0x14a   :  { %v393_v9 = vpop.f32.mrf.mxu3 }
 0x14b   :  { %v394_v10 = vadd.f32 %v641_v49, %v393_v9 }
 0x14d   :  { %v417_v13 = vmax.f32 %v394_v10, 0.0 }
 0x14e   :  { %v378_v14 = vpop.f32.mrf.mxu1 }
 0x14f   :  { %v606_v15 = vpack.c.bf16 %v417_v13, %v416_v11  ;;  %v379_v16 = vadd.f32 %v641_v49, %v378_v14 }
 0x151   :  { %622 = vst [vmem:[%s770_s4 + $0x28] sm:$0xff] %v606_v15   ;;  %v411_v18 = vmax.f32 %v379_v16, 0.0 }
 0x152   :  { %v396_v19 = vpop.f32.mrf.mxu3 }
 0x153   :  { %v591_v20 = vpack.c.bf16 %v411_v18, %v410_v17  ;;  %v397_v22 = vadd.f32 %v641_v49, %v396_v19 }
 0x155   :  { %619 = vst [vmem:[%s770_s4 + $0x10] sm:$0xff] %v591_v20   ;;  %v418_v25 = vmax.f32 %v397_v22, 0.0 }
 0x156   :  { %v381_v21 = vpop.f32.mrf.mxu1 }
 0x157   :  { %v382_v26 = vadd.f32 %v641_v49, %v381_v21 }
 0x159   :  { %v412_v31 = vmax.f32 %v382_v26, 0.0 }
 0x15a   :  { %v398_v23 = vpop.f32.mrf.mxu3 }
 0x15b   :  { %v399_v24 = vadd.f32 %v641_v49, %v398_v23 }
 0x15d   :  { %v419_v27 = vmax.f32 %v399_v24, 0.0 }
 0x15e   :  { %v383_v28 = vpop.f32.mrf.mxu1 }
 0x15f   :  { %v611_v29 = vpack.c.bf16 %v419_v27, %v418_v25  ;;  %v384_v30 = vadd.f32 %v641_v49, %v383_v28 }
 0x161   :  { %623 = vst [vmem:[%s770_s4 + $0x30] sm:$0xff] %v611_v29   ;;  %v413_v32 = vmax.f32 %v384_v30, 0.0 }
 0x162   :  { %v401_v33 = vpop.f32.mrf.mxu3 }
 0x163   :  { %v596_v34 = vpack.c.bf16 %v413_v32, %v412_v31  ;;  %v402_v35 = vadd.f32 %v641_v49, %v401_v33 }
 0x165   :  { %620 = vst [vmem:[%s770_s4 + $0x18] sm:$0xff] %v596_v34   ;;  %v420_v38 = vmax.f32 %v402_v35, 0.0 }
 0x16a   :  { %v403_v36 = vpop.f32.mrf.mxu3 }
 0x16b   :  { %v404_v37 = vadd.f32 %v641_v49, %v403_v36 }
 0x16d   :  { %v421_v39 = vmax.f32 %v404_v37, 0.0 }
 0x16f   :  { %v616_v40 = vpack.c.bf16 %v421_v39, %v420_v38 }
 0x171   :  { %624 = vst [vmem:[%s770_s4 + $0x38] sm:$0xff] %v616_v40  }

// kernel: crystal_xas_forward.5
= control target key start
LH: loop header
LB: loop body
LE: loop exit
PB: predicated region body
PF: predicated region fallthrough
CT: control target
= control target key end

     0   :  { %s971_s1 = inlined_call_operand.vmem [shape: bf16[128,128], index: 1, kind: input, shape index: {}]   ;;  %s972_s3 = inlined_call_operand.vmem [shape: bf16[128,128], index: 3, kind: input, shape index: {}]   ;;  %s973_s4 = inlined_call_operand.vmem [shape: bf16[128,128], index: 4, kind: input, shape index: {}]   ;;  %s974_s5 = inlined_call_operand.vmem [shape: bf16[128,128], index: 5, kind: input, shape index: {}]   ;;  %s975_s0 = inlined_call_operand.vmem [shape: bf16[8,128], index: 0, kind: input, shape index: {}]   ;;  %s976_s2 = inlined_call_operand.vmem [shape: bf16[8,128], index: 2, kind: input, shape index: {}]   ;;  %s977_s6 = inlined_call_operand.vmem [shape: bf16[128,128], index: 6, kind: input, shape index: {}]   ;;  %s978_s8 = inlined_call_operand.vmem [shape: f32[8,128], index: 8, kind: input, shape index: {}]   ;;  %s979_s7 = inlined_call_operand.vmem [shape: bf16[128,128], index: 7, kind: input, shape index: {}]   ;;  %s980_s9 = inlined_call_operand.vmem [shape: f32[8,128], index: 9, kind: output, shape index: {}]  }
   0x1   :  { %v724_v0 = vld [vmem:[%s971_s1 + $0x38] sm:$0xff]  ;;  %v723_v2 = vld [vmem:[%s971_s1 + $0x30] sm:$0xff]  ;;  %v722_v4 = vld [vmem:[%s971_s1 + $0x28] sm:$0xff] }
   0x2   :  { %v732_v1 = vld [vmem:[%s972_s3 + $0x38] sm:$0xff]  ;;  %103 = vmatpush.bf16.msra.mxu0 %v724_v0  ;;  %v731_v3 = vld [vmem:[%s972_s3 + $0x30] sm:$0xff]  ;;  %v730_v5 = vld [vmem:[%s972_s3 + $0x28] sm:$0xff] }
   0x3   :  { %188 = vmatpush.bf16.msra.mxu1 %v732_v1  ;;  %v740_v6 = vld [vmem:[%s973_s4 + $0x38] sm:$0xff]  ;;  %v739_v8 = vld [vmem:[%s973_s4 + $0x30] sm:$0xff]  ;;  %v721_v10 = vld [vmem:[%s971_s1 + $0x20] sm:$0xff] }
   0x4   :  { %v748_v7 = vld [vmem:[%s974_s5 + $0x38] sm:$0xff]  ;;  %345 = vmatpush.bf16.msra.mxu3 %v740_v6  ;;  %v747_v9 = vld [vmem:[%s974_s5 + $0x30] sm:$0xff]  ;;  %v729_v11 = vld [vmem:[%s972_s3 + $0x20] sm:$0xff] }
   0x5   :  { %284 = vmatpush.bf16.msra.mxu2 %v748_v7  ;;  %v738_v12 = vld [vmem:[%s973_s4 + $0x28] sm:$0xff]  ;;  %v720_v14 = vld [vmem:[%s971_s1 + $0x18] sm:$0xff]  ;;  %v737_v16 = vld [vmem:[%s973_s4 + $0x20] sm:$0xff] }
   0x6   :  { %104 = vmatpush.bf16.msra.mxu0 %v723_v2  ;;  %v746_v13 = vld [vmem:[%s974_s5 + $0x28] sm:$0xff]  ;;  %v728_v15 = vld [vmem:[%s972_s3 + $0x18] sm:$0xff]  ;;  %v745_v17 = vld [vmem:[%s974_s5 + $0x20] sm:$0xff] }
   0x7   :  { %189 = vmatpush.bf16.msra.mxu1 %v731_v3  ;;  %v719_v18 = vld [vmem:[%s971_s1 + $0x10] sm:$0xff]  ;;  %v736_v20 = vld [vmem:[%s973_s4 + $0x18] sm:$0xff]  ;;  %v718_v22 = vld [vmem:[%s971_s1 + $0x8] sm:$0xff] }
   0x8   :  { %346 = vmatpush.bf16.msra.mxu3 %v739_v8  ;;  %v727_v19 = vld [vmem:[%s972_s3 + $0x10] sm:$0xff]  ;;  %v744_v21 = vld [vmem:[%s974_s5 + $0x18] sm:$0xff]  ;;  %v726_v23 = vld [vmem:[%s972_s3 + $0x8] sm:$0xff] }
   0x9   :  { %285 = vmatpush.bf16.msra.mxu2 %v747_v9  ;;  %v735_v24 = vld [vmem:[%s973_s4 + $0x10] sm:$0xff]  ;;  %v717_v26 = vld [vmem:[%s971_s1] sm:$0xff]  ;;  %v734_v28 = vld [vmem:[%s973_s4 + $0x8] sm:$0xff] }
   0xa   :  { %105 = vmatpush.bf16.msra.mxu0 %v722_v4  ;;  %v743_v25 = vld [vmem:[%s974_s5 + $0x10] sm:$0xff]  ;;  %v725_v27 = vld [vmem:[%s972_s3] sm:$0xff]  ;;  %v742_v29 = vld [vmem:[%s974_s5 + $0x8] sm:$0xff] }
   0xb   :  { %190 = vmatpush.bf16.msra.mxu1 %v730_v5  ;;  %v38_v30 = vld [vmem:[%s975_s0] sm:$0xf]  ;;  %v756_v34 = vld [vmem:[%s977_s6 + $0x38] sm:$0xff]  ;;  %v755_v35 = vld [vmem:[%s977_s6 + $0x30] sm:$0xff] }
   0xc   :  { %347 = vmatpush.bf16.msra.mxu3 %v738_v12  ;;  %v122_v31 = vld [vmem:[%s976_s2] sm:$0xf]  ;;  %v754_v36 = vld [vmem:[%s977_s6 + $0x28] sm:$0xff]  ;;  %v752_v38 = vld [vmem:[%s977_s6 + $0x18] sm:$0xff] }
   0xd   :  { %286 = vmatpush.bf16.msra.mxu2 %v746_v13  ;;  %v733_v32 = vld [vmem:[%s973_s4] sm:$0xff]  ;;  %v751_v48 = vld [vmem:[%s977_s6 + $0x10] sm:$0xff]  ;;  %v750_v49 = vld [vmem:[%s977_s6 + $0x8] sm:$0xff] }
   0xe   :  { %106 = vmatpush.bf16.msra.mxu0 %v721_v10  ;;  %v741_v33 = vld [vmem:[%s974_s5] sm:$0xff]  ;;  %v764_v51 = vld [vmem:[%s979_s7 + $0x38] sm:$0xff]  ;;  %v763_v52 = vld [vmem:[%s979_s7 + $0x30] sm:$0xff] }
   0xf   :  { %191 = vmatpush.bf16.msra.mxu1 %v729_v11  ;;  %v753_v37 = vld [vmem:[%s977_s6 + $0x20] sm:$0xff]  ;;  %v762_v53 = vld [vmem:[%s979_s7 + $0x28] sm:$0xff]  ;;  %v760_v55 = vld [vmem:[%s979_s7 + $0x18] sm:$0xff] }
  0x10   :  { %348 = vmatpush.bf16.msra.mxu3 %v737_v16  ;;  %v121_v39 = vld [vmem:[%s978_s8] sm:$0xff]  ;;  %v759_v56 = vld [vmem:[%s979_s7 + $0x10] sm:$0xff]  ;;  %v758_v2 = vld [vmem:[%s979_s7 + $0x8] sm:$0xff] }
  0x11   :  { %287 = vmatpush.bf16.msra.mxu2 %v745_v17  ;;  %v139_v40 = vperm.slane %v121_v39, 0  ;;  %v749_v50 = vld [vmem:[%s977_s6] sm:$0xff]  ;;  %v358_v58 = vperm.slane %v121_v39, 1  ;;  %v378_v4 = vperm.slane %v121_v39, 2  ;;  %v458_v10 = vperm.slane %v121_v39, 3 }
  0x12   :  { %107 = vmatpush.bf16.msra.mxu0 %v720_v14  ;;  %v761_v54 = vld [vmem:[%s979_s7 + $0x20] sm:$0xff] }
  0x13   :  { %192 = vmatpush.bf16.msra.mxu1 %v728_v15  ;;  %v757_v3 = vld [vmem:[%s979_s7] sm:$0xff] }
  0x14   :  { %349 = vmatpush.bf16.msra.mxu3 %v736_v20 }
  0x15   :  { %288 = vmatpush.bf16.msra.mxu2 %v744_v21 }
  0x16   :  { %108 = vmatpush.bf16.msra.mxu0 %v719_v18 }
  0x17   :  { %193 = vmatpush.bf16.msra.mxu1 %v727_v19 }
  0x18   :  { %350 = vmatpush.bf16.msra.mxu3 %v735_v24 }
  0x19   :  { %289 = vmatpush.bf16.msra.mxu2 %v743_v25 }
  0x1a   :  { %109 = vmatpush.bf16.msra.mxu0 %v718_v22 }
  0x1b   :  { %194 = vmatpush.bf16.msra.mxu1 %v726_v23 }
  0x1c   :  { %351 = vmatpush.bf16.msra.mxu3 %v734_v28 }
  0x1d   :  { %290 = vmatpush.bf16.msra.mxu2 %v742_v29 }
  0x1e   :  { %110 = vmatpush.bf16.msra.mxu0 %v717_v26 }
  0x1f   :  { %195 = vmatpush.bf16.msra.mxu1 %v725_v27 }
  0x20   :  { %352 = vmatpush.bf16.msra.mxu3 %v733_v32 }
  0x21   :  { %111 = vmatmul.bf16.vlgmr.msra.gmra.mxu0 %v38_v30  ;;  %291 = vmatpush.bf16.msra.mxu2 %v741_v33 }
  0x22   :  { %196 = vmatmul.bf16.vlgmr.msra.gmra.mxu1 %v122_v31  ;;  %427 = vmatpush.bf16.msrb.mxu0 %v756_v34 }
  0x23   :  { %507 = vmatpush.bf16.msrb.mxu1 %v764_v51 }
  0x26   :  { %428 = vmatpush.bf16.msrb.mxu0 %v755_v35 }
  0x27   :  { %508 = vmatpush.bf16.msrb.mxu1 %v763_v52 }
  0x2a   :  { %429 = vmatpush.bf16.msrb.mxu0 %v754_v36 }
  0x2b   :  { %509 = vmatpush.bf16.msrb.mxu1 %v762_v53 }
  0x2e   :  { %430 = vmatpush.bf16.msrb.mxu0 %v753_v37 }
  0x2f   :  { %510 = vmatpush.bf16.msrb.mxu1 %v761_v54 }
  0x32   :  { %431 = vmatpush.bf16.msrb.mxu0 %v752_v38 }
  0x33   :  { %511 = vmatpush.bf16.msrb.mxu1 %v760_v55 }
  0x36   :  { %432 = vmatpush.bf16.msrb.mxu0 %v751_v48 }
  0x37   :  { %512 = vmatpush.bf16.msrb.mxu1 %v759_v56 }
  0x3a   :  { %433 = vmatpush.bf16.msrb.mxu0 %v750_v49 }
  0x3b   :  { %513 = vmatpush.bf16.msrb.mxu1 %v758_v2 }
  0x3e   :  { %434 = vmatpush.bf16.msrb.mxu0 %v749_v50 }
  0x3f   :  { %514 = vmatpush.bf16.msrb.mxu1 %v757_v3 }
  0x9e   :  { %v112_v41 = vpop.f32.mrf.mxu0 }
  0x9f   :  { %v197_v42 = vpop.f32.mrf.mxu1  ;;  %v218_v43 = vpack.c.bf16 %v112_v41, %v112_v41 }
  0xa0   :  { %v198_v44 = vadd.f32 %v197_v42, %v139_v40 }
  0xa1   :  { %353 = vmatmul.bf16.vlgmr.msra.gmra.mxu3 %v218_v43 }
  0xa2   :  { %v235_v45 = vpack.c.bf16 %v198_v44, %v198_v44 }
  0xa4   :  { %292 = vmatmul.bf16.vlgmr.msra.gmra.mxu2 %v235_v45 }
  0xa6   :  { %v114_v46 = vpop.f32.mrf.mxu0 }
  0xa7   :  { %v199_v47 = vpop.f32.mrf.mxu1 }
 0x124   :  { %v354_v57 = vpop.f32.mrf.mxu3 }
 0x127   :  { %v293_v59 = vpop.f32.mrf.mxu2 }
 0x128   :  { %v355_v60 = vadd.f32 %v354_v57, %v293_v59 }
 0x12a   :  { %v359_v61 = vadd.f32 %v358_v58, %v355_v60 }
 0x12c   :  { %v360_v62 = vmax.f32 %v359_v61, 0.0  ;;  %v356_v63 = vpop.f32.mrf.mxu3 }
 0x12e   :  { %v377_v0 = vpack.c.bf16 %v360_v62, %v360_v62 }
 0x12f   :  { %v295_v1 = vpop.f32.mrf.mxu2 }
 0x130   :  { %435 = vmatmul.bf16.vlgmr.msrb.gmra.mxu0 %v377_v0 }
 0x1ad   :  { %v436_v5 = vpop.f32.mrf.mxu0 }
 0x1ae   :  { %v437_v6 = vadd.f32 %v436_v5, %v378_v4 }
 0x1b0   :  { %v440_v7 = vmax.f32 %v437_v6, 0.0 }
 0x1b2   :  { %v457_v8 = vpack.c.bf16 %v440_v7, %v440_v7 }
 0x1b4   :  { %515 = vmatmul.bf16.vlgmr.msrb.gmra.mxu1 %v457_v8 }
 0x1b5   :  { %v438_v9 = vpop.f32.mrf.mxu0 }
 0x231   :  { %v516_v11 = vpop.f32.mrf.mxu1 }
 0x232   :  { %v517_v12 = vadd.f32 %v516_v11, %v458_v10 }
 0x234   :  { %520 = vst [vmem:[%s980_s9] sm:$0xff] %v517_v12 }
 0x239   :  { %v518_v13 = vpop.f32.mrf.mxu1 }

</bundles_post_ra>
